<compile_context>
chip_gen: v7x
topology: tpu7x:2x2x1
jax: 0.10.0
libtpu: 0.0.40
codegen_flags: <defaults>
</compile_context>

<pallas_src>
import functools
import math

import jax
import jax.numpy as jnp
from jax.experimental import pallas as pl
from jax.experimental.pallas import tpu as pltpu


def _ipow(x, n):
    """x**n for a static positive integer n via repeated VPU multiplies."""
    result = None
    base = x
    while n > 0:
        if n & 1:
            result = base if result is None else result * base
        n >>= 1
        if n:
            base = base * base
    return result


def _gem_kernel(*refs, eps, inv_hw, p_static, has_seg):
    # refs layout: [p (SMEM, only if p is learnable)], x, [seg (only if packed)], out
    idx = 0
    if p_static is None:
        p_ref = refs[idx]
        idx += 1
    x_ref = refs[idx]
    idx += 1
    seg_ref = None
    if has_seg:
        seg_ref = refs[idx]
        idx += 1
    o_ref = refs[idx]

    x = x_ref[...].astype(jnp.float32)      # accumulate in f32
    xc = jnp.maximum(x, eps)                # clamp(min=eps); xc >= eps > 0

    if p_static is None:
        p = p_ref[0]                        # learnable exponent (traced)
        inv_p = 1.0 / p
        xp = jnp.exp(p * jnp.log(xc))       # x ** p via EUP exp/log
    else:
        inv_p = 1.0 / p_static
        p_int = int(round(p_static))
        if abs(p_static - p_int) < 1e-12 and 1 <= p_int <= 16:
            xp = _ipow(xc, p_int)           # VPU-only fast path (default p=3)
        else:
            xp = jnp.exp(p_static * jnp.log(xc))

    if has_seg:
        # Exact segmented sum on the MXU: bf16 hi/lo split keeps the result
        # f32-accurate even if the matmul inputs are demoted to bf16.
        hi = xp.astype(jnp.bfloat16)
        lo = (xp - hi.astype(jnp.float32)).astype(jnp.bfloat16)
        seg = seg_ref[...]
        sums = (jnp.dot(hi, seg, preferred_element_type=jnp.float32)
                + jnp.dot(lo, seg, preferred_element_type=jnp.float32))
    else:
        sums = jnp.sum(xp, axis=-1, keepdims=True)

    mean = sums * inv_hw                    # avg_pool2d over the full (H, W)
    # final ** (1/p); mean > 0 so exp(log(mean) * inv_p) is safe
    o_ref[...] = jnp.exp(jnp.log(mean) * inv_p).astype(o_ref.dtype)


def _choose_group(nc, hw):
    """Channels packed per lane row. >1 only when HW is lane-sparse (<128)."""
    if hw >= 128:
        return 1
    g = math.gcd(nc, 128)                   # power-of-two divisor of NC, <= 128
    # cap the block-diagonal reduction matrix (L x G, bf16) at ~4 MiB
    while g > 1 and g * g * hw * 2 > 4 * 1024 * 1024:
        g //= 2
    return max(g, 1)


def _vmem_limit_bytes():
    """Generation-aware scoped-VMEM request (~96 MiB v5e/v6e, ~48 MiB v7x)."""
    cap = None
    try:
        cap = getattr(pltpu.get_tpu_info(), "vmem_capacity_bytes", None)
    except Exception:
        cap = None
    if not cap:
        cap = 64 * 1024 * 1024              # conservative: v7x per-core physical
    return int(min(cap * 3 // 4, 100 * 1024 * 1024))


def _choose_block_rows(r, lane_padded, in_bytes, vmem_limit, fixed_bytes):
    """Row tile: fill ~60% of the VMEM limit with the double-buffered input
    plus in-kernel f32 temps, then cap so the parallel grid has >=8 steps
    (v7x megacore) when there are enough rows."""
    per_row = 2 * lane_padded * in_bytes + 2 * lane_padded * 4
    budget = max(int(0.6 * vmem_limit) - fixed_bytes, per_row * 8)
    block = min(r, max(8, budget // per_row))
    if r >= 64:
        block = min(block, pl.cdiv(r, 8))
    elif r >= 16:
        block = min(block, pl.cdiv(r, 2))
    if block < r:
        block = max(8, (block // 8) * 8)    # sublane alignment
    return int(block)


def gem_pool(x, p, eps=1e-6, block_rows=None):
    """GeM pooling. x: (N, C, H, W).  p: learnable (1,) array, or a Python
    number for the static fast path.  Returns (N, C, 1, 1)."""
    N, C, H, W = x.shape
    NC, HW = N * C, H * W

    if isinstance(p, (int, float)):
        p_static, p_arr = float(p), None
    else:
        p_static, p_arr = None, jnp.asarray(p, dtype=jnp.float32).reshape((1,))

    G = _choose_group(NC, HW)
    R, L = NC // G, G * HW
    x2d = x.reshape(R, L)
    has_seg = G > 1

    in_bytes = jnp.dtype(x.dtype).itemsize
    lane_padded = pl.cdiv(L, 128) * 128
    vmem_limit = _vmem_limit_bytes()
    seg_bytes = L * G * 2 if has_seg else 0
    if block_rows is None:
        block_rows = _choose_block_rows(R, lane_padded, in_bytes, vmem_limit,
                                        2 * seg_bytes)
    grid = (pl.cdiv(R, block_rows),)

    inputs, in_specs = [], []
    if p_arr is not None:
        inputs.append(p_arr)
        in_specs.append(pl.BlockSpec(memory_space=pltpu.SMEM))     # scalar p
    inputs.append(x2d)
    in_specs.append(pl.BlockSpec((block_rows, L), lambda i: (i, 0)))
    if has_seg:
        # block-diagonal 0/1 matrix: seg[k, j] = 1  iff  k // HW == j
        seg = (jnp.arange(L, dtype=jnp.int32)[:, None] // HW ==
               jnp.arange(G, dtype=jnp.int32)[None, :]).astype(jnp.bfloat16)
        inputs.append(seg)
        in_specs.append(pl.BlockSpec((L, G), lambda i: (0, 0)))    # resident

    cost = pl.CostEstimate(
        flops=int(3 * NC * HW + (4 * R * L * G if has_seg else NC * HW)),
        transcendentals=int((2 * NC * HW if p_static is None else 0) + 2 * NC),
        bytes_accessed=int(NC * HW * in_bytes + NC * in_bytes + seg_bytes),
    )

    out2d = pl.pallas_call(
        functools.partial(_gem_kernel, eps=eps, inv_hw=1.0 / HW,
                          p_static=p_static, has_seg=has_seg),
        out_shape=jax.ShapeDtypeStruct((R, G), x.dtype),
        grid=grid,
        in_specs=in_specs,
        out_specs=pl.BlockSpec((block_rows, G), lambda i: (i, 0)),
        compiler_params=pltpu.CompilerParams(
            dimension_semantics=("parallel",),     # shards rows across v7x TCs
            vmem_limit_bytes=vmem_limit,
        ),
        cost_estimate=cost,
    )(*inputs)

    # (R, G) row-major flattening restores the original (N*C) channel order.
    return out2d.reshape(N, C, 1, 1)


def _gem_ref(x, p, eps):
    # pure-JAX reference: F.avg_pool2d(clamp(x, eps)**p, (H, W)) ** (1/p)
    xp = jnp.maximum(x, eps) ** p[0]
    return jnp.mean(xp, axis=(-2, -1), keepdims=True) ** (1.0 / p[0])


if __name__ == "__main__":
    eps = 1e-6
    # deterministic parameter init matching GeM.__init__: p = ones(1) * 3
    p = jnp.ones((1,), dtype=jnp.float32) * 3.0

    # 1) small shape from the module's forward (HW >= 128 -> unpacked path)
    x = jax.random.uniform(jax.random.PRNGKey(0), (2, 4, 16, 16), dtype=jnp.float32)
    out = gem_pool(x, p, eps)
    jax.block_until_ready(out)
    ref = _gem_ref(x, p, eps)
    assert out.shape == (2, 4, 1, 1)
    assert jnp.allclose(out, ref, atol=1e-5, rtol=1e-4)

    # 2) small-HW shape (7x7 feature map) -> packed lane-dense MXU path, learnable p
    x2 = jax.random.uniform(jax.random.PRNGKey(1), (4, 256, 7, 7), dtype=jnp.float32)
    out2 = gem_pool(x2, p, eps)
    jax.block_until_ready(out2)
    ref2 = _gem_ref(x2, p, eps)
    assert out2.shape == (4, 256, 1, 1)
    assert jnp.allclose(out2, ref2, atol=1e-5, rtol=1e-4)

    # 3) packed path with grid > 1 and a partial last block; static p=3 fast path
    x3 = jax.random.uniform(jax.random.PRNGKey(2), (2, 600, 8, 8), dtype=jnp.float32)
    out3 = gem_pool(x3, 3, eps)
    jax.block_until_ready(out3)
    ref3 = _gem_ref(x3, p, eps)
    assert out3.shape == (2, 600, 1, 1)
    assert jnp.allclose(out3, ref3, atol=1e-5, rtol=1e-4)

    print("KERNEL_OK")
</pallas_src>

<mosaic_0001>
module attributes {stable_mosaic.version = 11 : i64} {
  func.func @_gem_kernel(%arg0: i32, %arg1: memref<1xf32, #tpu.memory_space<smem>>, %arg2: memref<8x256xf32, #tpu.memory_space<vmem>>, %arg3: memref<8x1xf32, #tpu.memory_space<vmem>>) attributes {dimension_semantics = [#tpu.dimension_semantics<parallel>], iteration_bounds = array<i64: 1>, scalar_prefetch = 0 : i64, scratch_operands = 0 : i64, tpu.core_type = #tpu.core_type<tc>, window_params = [{transform_indices = @transform_0, window_bounds = array<i64: 1>}, {transform_indices = @transform_1, window_bounds = array<i64: 8, 256>}, {transform_indices = @transform_2, window_bounds = array<i64: 8, 1>}]} {
    %c0 = arith.constant 0 : index
    %c0_0 = arith.constant 0 : index
    %0 = vector.load %arg2[%c0, %c0_0] : memref<8x256xf32, #tpu.memory_space<vmem>>, vector<8x256xf32>
    %cst = arith.constant 9.99999997E-7 : f32
    %1 = vector.broadcast %cst : f32 to vector<8x256xf32>
    %2 = arith.maximumf %0, %1 : vector<8x256xf32>
    %c0_1 = arith.constant 0 : index
    %3 = memref.load %arg1[%c0_1] : memref<1xf32, #tpu.memory_space<smem>>
    %cst_2 = arith.constant 1.000000e+00 : f32
    %4 = arith.divf %cst_2, %3 : f32
    %5 = math.log %2 : vector<8x256xf32>
    %6 = vector.broadcast %3 : f32 to vector<8x256xf32>
    %7 = arith.mulf %6, %5 : vector<8x256xf32>
    %8 = math.exp %7 : vector<8x256xf32>
    %cst_3 = arith.constant dense<0.000000e+00> : vector<8xf32>
    %9 = vector.multi_reduction <add>, %8, %cst_3 [1] : vector<8x256xf32> to vector<8xf32>
    %10 = vector.shape_cast %9 : vector<8xf32> to vector<8x1xf32>
    %cst_4 = arith.constant 3.906250e-03 : f32
    %11 = vector.broadcast %cst_4 : f32 to vector<8x1xf32>
    %12 = arith.mulf %10, %11 : vector<8x1xf32>
    %13 = math.log %12 : vector<8x1xf32>
    %14 = vector.broadcast %4 : f32 to vector<8x1xf32>
    %15 = arith.mulf %13, %14 : vector<8x1xf32>
    %16 = math.exp %15 : vector<8x1xf32>
    %c0_5 = arith.constant 0 : index
    %c0_6 = arith.constant 0 : index
    %17 = vector.load %arg3[%c0_5, %c0_6] : memref<8x1xf32, #tpu.memory_space<vmem>>, vector<8x1xf32>
    tpu.vector_store %arg3[%c0_5, %c0_6], %16 {strides = array<i32>} : memref<8x1xf32, #tpu.memory_space<vmem>>, vector<8x1xf32>,
    return
  }
  func.func @transform_0(%arg0: i32) -> i32 {
    %c0_i32 = arith.constant 0 : i32
    %c0_i32_0 = arith.constant 0 : i32
    return %c0_i32 : i32
  }
  func.func @transform_1(%arg0: i32) -> (i32, i32) {
    %c0_i32 = arith.constant 0 : i32
    %c0_i32_0 = arith.constant 0 : i32
    return %arg0, %c0_i32 : i32, i32
  }
  func.func @transform_2(%arg0: i32) -> (i32, i32) {
    %c0_i32 = arith.constant 0 : i32
    %c0_i32_0 = arith.constant 0 : i32
    return %arg0, %c0_i32 : i32, i32
  }
}

</mosaic_0001>

<bundles_post_ra>
// kernel: tpu_custom_call.1
= control target key start
LH: loop header
LB: loop body
LE: loop exit
PB: predicated region body
PF: predicated region fallthrough
CT: control target
= control target key end

     0   :  { %8 = vsyncpa [#allocation4], 0  ;;  %s101_s9 = smov [#allocation3]   ;;  %s135_s0 = inlined_call_operand.<no memory space> [shape: f32[1], index: 0, kind: input, shape index: {}]   ;;  %s136_s1 = inlined_call_operand.hbm [shape: f32[8,256], index: 1, kind: input, shape index: {}]   ;;  %s137_s2 = inlined_call_operand.vmem [shape: f32[8,1], index: 2, kind: output, shape index: {}]  }
   0x1   :  { %s17_s10 = sshll.u32 %s101_s9, 4  ;;  %s77_s13 = scalar_lea.hbm %s136_s1, 256  ;;  %s18_s10 = int_to_ptr.vmem [resolvable:$true] %s17_s10 }
   0x2   :  { %p78_p0 = scmp.ne.s32.totalorder %s136_s1, %s77_s13  ;;  %p81_p1 = scmp.lt.u32.totalorder %s77_s13, %s136_s1 }
   0x4   :  { %p83_p2 = pnand %p81_p1, %p78_p0 }
   0x6   :  { %86 = shalt.err (!%p83_p2)
}
   0x7   :  { %s87_s18 = scalar_lea.vmem %s18_s10, 256  ;;  %p92_p4 = scmp.lt.s32.totalorder %s18_s10, %s18_s10 }
   0x8   :  { %p88_p3 = scmp.ne.s32.totalorder %s18_s10, %s87_s18  ;;  %p93_p5 = scmp.lt.s32.totalorder %s87_s18, %s87_s18 }
   0xa   :  { %p94_p6 = por %p93_p5, %p92_p4 }
   0xc   :  { %p95_p7 = pnand %p94_p6, %p88_p3 }
   0xe   :  { %98 = shalt.err (!%p95_p7)
}
   0xf   :  { %20 = dma.hbm_to_vmem [thread:$0]  %s136_s1, 256, %s18_s10, [#allocation4]  }
  0x10   :  { %99 = dma.done.wait [#allocation4], 256  }
  0x11   :  { %100 = vsyncadd [#allocation4], 4294967040  ;;  %v29_v0 = vstv %s135_s0  ;;  %v24_v1 = vld [vmem:[#allocation3] sm:$0xff]  ;;  %v25_v2 = vld [vmem:[#allocation3 + $0x8] sm:$0xff]  ;;  %vm53_vm0 = vcmask 7168  }
  0x12   :  { %63 = vrcp.f32 %v29_v0  ;;  %v26_v3 = vmax.f32 %v24_v1, 1e-06  ;;  %v27_v4 = vmax.f32 %v25_v2, 1e-06 }
  0x14   :  { %65 = vlog2.f32 %v26_v3 }
  0x15   :  { %67 = vlog2.f32 %v27_v4 }
  0x1c   :  { %v64_v5 = vpop.eup %63 }
  0x1d   :  { %60 = vpush %v64_v5 }
  0x1e   :  { %v66_v6 = vpop.eup %65 }
  0x1f   :  { %v68_v7 = vpop.eup %67  ;;  %v33_v8 = vmul.f32 0.6931472, %v66_v6 }
  0x20   :  { %v35_v9 = vmul.f32 0.6931472, %v68_v7 }
  0x21   :  { %v37_v10 = vmul.f32 %v33_v8, %v29_v0 }
  0x22   :  { %v38_v11 = vmul.f32 %v35_v9, %v29_v0 }
  0x23   :  { %v39_v12 = vmul.f32 1.442695, %v37_v10 }
  0x24   :  { %v41_v13 = vmul.f32 1.442695, %v38_v11 }
  0x25   :  { %69 = vpow2.f32 %v39_v12 }
  0x26   :  { %71 = vpow2.f32 %v41_v13 }
  0x2f   :  { %v70_v14 = vpop.eup %69 }
  0x30   :  { %v72_v15 = vpop.eup %71 }
  0x31   :  { %v43_v16 = vadd.f32 %v72_v15, %v70_v14 }
  0x33   :  { %44 = vadd.xlane.f32.xlu0 %v43_v16 }
  0x4e   :  { %s61_s0 = spop %60 }
  0x4f   :  { %v49_v20 = vstv %s61_s0 }
  0xc0   :  { %v45_v17 = vpop.xlane.xlu0 %44 }
  0xc1   :  { %v46_v18 = vmul.f32 0.00390625, %v45_v17 }
  0xc3   :  { %73 = vlog2.f32 %v46_v18 }
  0xcd   :  { %v74_v19 = vpop.eup %73 }
  0xce   :  { %v48_v21 = vmul.f32 0.6931472, %v74_v19 }
  0xd0   :  { %v50_v22 = vmul.f32 %v49_v20, %v48_v21 }
  0xd2   :  { %v51_v23 = vmul.f32 1.442695, %v50_v22 }
  0xd4   :  { %75 = vpow2.f32 %v51_v23 }
  0xde   :  { %v76_v24 = vpop.eup %75 }
  0xdf   :  { %54 = vst.msk [vmem:[%s137_s2] sm:$0xff] %vm53_vm0, %v76_v24 }
  0xe0   :  { %59 = vsyncpa [#allocation4], 1 }

</bundles_post_ra>
